<compile_context>
chip_gen: v7x
topology: tpu7x:2x2x1
jax: 0.10.0
libtpu: 0.0.40
codegen_flags: <defaults>
</compile_context>

<pallas_src>
import functools

import numpy as np
import jax
import jax.numpy as jnp
from jax.experimental import pallas as pl
from jax.experimental.pallas import tpu as pltpu

_EPS = float(np.finfo(np.float32).tiny)   # analogue of torch.finfo(float64).smallest_normal


# ------------------------------ Pallas kernel ------------------------------

def _cof_kernel(a_ref, b_ref, o_ref, *, n_half, num_term):
    """One row tile: packed complex matmul + fused entropy + per-batch reduce.

    a_ref: (m_tile, 2*rank)        f32, rows = [re(mat_st row) | im(mat_st row)]
    b_ref: (2*rank, 2*n_half)      f32, [[br, bi], [-bi, br]] with each half
                                   zero-padded to n_half (multiple of 128)
    o_ref: (gtb, n_half)           f32, per-(within-tile batch) column partials
    """
    a = a_ref[...]                                                       # (m_tile, 2*rank)
    res = jnp.dot(a, b_ref[...], preferred_element_type=jnp.float32)    # (m_tile, 2*n_half)
    tr = res[:, :n_half]                                                 # lane-aligned split
    ti = res[:, n_half:]

    p = tr * tr + ti * ti                                                # (m_tile, n_half)
    p_alpha = jnp.sum(p, axis=1, keepdims=True)                          # (m_tile, 1)  XLU
    log_pa = jnp.log(jnp.maximum(p_alpha, _EPS))                         # EUP on narrow column

    # t0 - t1 = sum_ij p_ij * (log(max(p_i,eps)) - log(max(p_ij,eps)))
    contrib = p * (log_pa - jnp.log(jnp.maximum(p, _EPS)))               # (m_tile, n_half)

    m_tile = p.shape[0]
    gtb = o_ref.shape[0]
    # 0/1 selection matrix: G[b, r] = 1 iff row r belongs to within-tile batch b.
    b_idx = jax.lax.broadcasted_iota(jnp.int32, (gtb, m_tile), 0)
    r_idx = jax.lax.broadcasted_iota(jnp.int32, (gtb, m_tile), 1)
    lo = b_idx * num_term
    g = ((r_idx >= lo) & (r_idx < lo + num_term)).astype(jnp.float32)

    # Per-batch partial column sums; lane-dense full-tile store.
    o_ref[...] = jnp.dot(g, contrib, preferred_element_type=jnp.float32)


def _pick_m_tile(m_rows, num_term):
    """Row-tile size: multiple of 8 and num_term; ~256 rows; >=2 tiles if possible."""
    unit = int(np.lcm(num_term, 8))
    target = max(unit, (256 // unit) * unit) if unit <= 256 else unit
    if m_rows >= 2 * target:
        return target
    half = -(-m_rows // 2)                       # aim for 2 tiles (v7x megacore)
    return max(unit, -(-half // unit) * unit)


def _cof_pallas(a_pack, b_pack):
    """a_pack: (B, num_term, 2*rank) f32; b_pack: (2*rank, 2*n_half) f32 -> (B,) f32."""
    batch, num_term, two_rank = a_pack.shape
    two_nhalf = b_pack.shape[1]
    n_half = two_nhalf // 2

    m_rows = batch * num_term
    m_tile = _pick_m_tile(m_rows, num_term)
    num_tiles = -(-m_rows // m_tile)
    m_pad = num_tiles * m_tile

    a_flat = a_pack.reshape(m_rows, two_rank)
    if m_pad != m_rows:
        # Zero rows give p_ij = 0 and contribute exactly 0 to the loss.
        a_flat = jnp.pad(a_flat, ((0, m_pad - m_rows), (0, 0)))

    tb = m_tile // num_term                      # batches per row tile
    gtb = -(-tb // 8) * 8                        # pad to a sublane multiple of 8

    # TODO(synk): if rank/dim grow large, add an N-tile over 2*n_half and set
    # vmem_limit_bytes so b_pack + double-buffered A tiles fit v7x's 64 MiB VMEM.
    out = pl.pallas_call(
        functools.partial(_cof_kernel, n_half=n_half, num_term=num_term),
        out_shape=jax.ShapeDtypeStruct((num_tiles, gtb, n_half), jnp.float32),
        grid=(num_tiles,),
        in_specs=[
            pl.BlockSpec((m_tile, two_rank), lambda i: (i, 0)),
            pl.BlockSpec((two_rank, two_nhalf), lambda i: (0, 0)),
        ],
        out_specs=pl.BlockSpec((None, gtb, n_half), lambda i: (i, 0, 0)),
        compiler_params=pltpu.CompilerParams(
            dimension_semantics=("parallel",)),   # v7x: split row tiles over 2 TCs
    )(a_flat, b_pack)

    # Trivial finishing reduction in XLA: sum over the 128-lane axis, drop padding.
    losses = out[:, :tb, :].reshape(num_tiles * tb, n_half).sum(axis=-1)
    return losses[:batch]


# -------------------------- device-resident glue ---------------------------

def stiefel_polar(theta_real, theta_imag):
    """numqi.manifold.Stiefel(method='polar'): X = A (A^H A)^{-1/2}, batched."""
    # TODO(synk): Hermitian eigh has no clean Pallas equivalent; it stays in XLA
    # (jnp.linalg.eigh) but is jitted together with the pallas_call.
    A = theta_real.astype(jnp.complex64) + 1j * theta_imag.astype(jnp.complex64)
    gram = jnp.einsum("...ji,...jk->...ik", jnp.conj(A), A)          # A^H A
    w, v = jnp.linalg.eigh(gram)
    inv_sqrt = jnp.einsum("...ik,...k,...jk->...ij",
                          v, 1.0 / jnp.sqrt(w), jnp.conj(v))
    return A @ inv_sqrt


def pack_sqrt_rho_Tconj(sqrt_rho_Tconj):
    """(rank, dim) complex -> (2*rank, 2*n_half) real block [[br, bi], [-bi, br]].

    Each half is zero-padded along columns to n_half = round_up(dim, 128) so the
    in-kernel tr/ti split lands exactly on a vreg lane boundary.  Built once at
    set_density_matrix time (B is fixed across the optimization loop).
    """
    b = jnp.asarray(sqrt_rho_Tconj, jnp.complex64)
    rank, dim = b.shape
    n_half = max(128, -(-dim // 128) * 128)
    pad = n_half - dim
    br = jnp.pad(jnp.real(b).astype(jnp.float32), ((0, 0), (0, pad)))
    bi = jnp.pad(jnp.imag(b).astype(jnp.float32), ((0, 0), (0, pad)))
    b1 = jnp.concatenate([br, -bi], axis=0)      # (2*rank, n_half)  -> tr
    b2 = jnp.concatenate([bi, br], axis=0)       # (2*rank, n_half)  -> ti
    return jnp.concatenate([b1, b2], axis=1)     # (2*rank, 2*n_half)


@jax.jit
def coherence_of_formation_batched(theta_real, theta_imag, b_pack):
    """Full device-resident forward for a batch of Stiefel candidates."""
    # TODO(synk): forward only; a custom_vjp backward kernel is needed before
    # this can replace the PyTorch module in gradient-based optimization.
    mat_st = stiefel_polar(theta_real, theta_imag)          # (B, num_term, rank) complex64
    a_pack = jnp.concatenate(
        [jnp.real(mat_st), jnp.imag(mat_st)], axis=-1).astype(jnp.float32)
    losses = _cof_pallas(a_pack, b_pack)
    return losses, mat_st


def coherence_of_formation_forward(mat_st, sqrt_rho_Tconj):
    """Single-instance API matching the module's forward()."""
    b_pack = pack_sqrt_rho_Tconj(sqrt_rho_Tconj)
    a_pack = jnp.concatenate(
        [jnp.real(mat_st), jnp.imag(mat_st)], axis=-1).astype(jnp.float32)[None]
    return _cof_pallas(a_pack, b_pack)[0]


# ----------------------------- setup (one-time) -----------------------------

def make_sqrt_rho_Tconj(rho, rank):
    """Replicates set_density_matrix(): returns (rank, dim) complex (numpy, one-time)."""
    EVL, EVC = np.linalg.eigh(rho)
    EVL = np.maximum(0.0, EVL[-rank:])
    EVC = EVC[:, -rank:]
    return np.ascontiguousarray((EVC * np.sqrt(EVL)).T.conj())


if __name__ == "__main__":
    dim, num_term, rank, batch = 4, 8, 4, 8

    key = jax.random.PRNGKey(0)
    k1, k2, k3, k4 = jax.random.split(key, 4)

    # Deterministic Hermitian PSD density matrix with trace 1.
    mr = np.asarray(jax.random.normal(k1, (dim, dim), dtype=jnp.float32), dtype=np.float64)
    mi = np.asarray(jax.random.normal(k2, (dim, dim), dtype=jnp.float32), dtype=np.float64)
    M = mr + 1j * mi
    rho = M @ M.conj().T
    rho = rho / np.trace(rho).real
    sqrt_rho_Tconj_np = make_sqrt_rho_Tconj(rho, rank)          # (rank, dim) complex128
    b_pack = pack_sqrt_rho_Tconj(sqrt_rho_Tconj_np)             # (2*rank, 2*n_half) f32

    # A batch of Stiefel-manifold parameters (many candidates per pallas_call).
    th_r = jax.random.normal(k3, (batch, num_term, rank), dtype=jnp.float32)
    th_i = jax.random.normal(k4, (batch, num_term, rank), dtype=jnp.float32)

    losses, mat_st = coherence_of_formation_batched(th_r, th_i, b_pack)
    losses = jax.block_until_ready(losses)

    # Pure numpy float64 reference of the forward pass, using the exact Stiefel
    # points realized on device (isolates kernel accuracy from eigh accuracy).
    mat_st_np = np.asarray(mat_st, dtype=np.complex128)
    ref = np.empty(batch, dtype=np.float64)
    for b in range(batch):
        tmp0 = mat_st_np[b] @ sqrt_rho_Tconj_np
        p_ai = tmp0.real ** 2 + tmp0.imag ** 2
        p_a = p_ai.sum(axis=1)
        ref[b] = (p_a @ np.log(np.maximum(p_a, _EPS))
                  - p_ai.reshape(-1) @ np.log(np.maximum(p_ai.reshape(-1), _EPS)))

    got = np.asarray(losses, dtype=np.float64)
    assert np.allclose(got, ref, atol=5e-4, rtol=5e-4), (got, ref)
    print("KERNEL_OK")
</pallas_src>

<mosaic_0001>
module attributes {stable_mosaic.version = 11 : i64} {
  func.func @_cof_kernel(%arg0: i32, %arg1: memref<32x8xf32, #tpu.memory_space<vmem>>, %arg2: memref<8x256xf32, #tpu.memory_space<vmem>>, %arg3: memref<1x8x128xf32, #tpu.memory_space<vmem>>) attributes {dimension_semantics = [#tpu.dimension_semantics<parallel>], iteration_bounds = array<i64: 2>, scalar_prefetch = 0 : i64, scratch_operands = 0 : i64, tpu.core_type = #tpu.core_type<tc>, window_params = [{transform_indices = @transform_0, window_bounds = array<i64: 32, 8>}, {pipeline_mode = #tpu.pipeline_mode<synchronous>, transform_indices = @transform_1, window_bounds = array<i64: 8, 256>}, {transform_indices = @transform_2, window_bounds = array<i64: 1, 8, 128>}]} {
    %c0 = arith.constant 0 : index
    %c0_0 = arith.constant 0 : index
    %0 = vector.load %arg1[%c0, %c0_0] : memref<32x8xf32, #tpu.memory_space<vmem>>, vector<32x8xf32>
    %c0_1 = arith.constant 0 : index
    %c0_2 = arith.constant 0 : index
    %1 = vector.load %arg2[%c0_1, %c0_2] : memref<8x256xf32, #tpu.memory_space<vmem>>, vector<8x256xf32>
    %cst = arith.constant dense<0.000000e+00> : vector<32x256xf32>
    %2 = tpu.matmul %0, %1, %cst {dimension_numbers = #tpu.dot_dimension_numbers<[1], [0], [0], [1], [0, 0, 1, 1], [], []>} : vector<32x8xf32>, vector<8x256xf32>, vector<32x256xf32> -> vector<32x256xf32>
    %3 = vector.extract_strided_slice %2 {offsets = [0, 0], sizes = [32, 128], strides = [1, 1]} : vector<32x256xf32> to vector<32x128xf32>
    %4 = vector.extract_strided_slice %2 {offsets = [0, 128], sizes = [32, 128], strides = [1, 1]} : vector<32x256xf32> to vector<32x128xf32>
    %5 = arith.mulf %3, %3 : vector<32x128xf32>
    %6 = arith.mulf %4, %4 : vector<32x128xf32>
    %7 = arith.addf %5, %6 : vector<32x128xf32>
    %cst_3 = arith.constant dense<0.000000e+00> : vector<32xf32>
    %8 = vector.multi_reduction <add>, %7, %cst_3 [1] : vector<32x128xf32> to vector<32xf32>
    %9 = vector.shape_cast %8 : vector<32xf32> to vector<32x1xf32>
    %cst_4 = arith.constant 1.17549435E-38 : f32
    %10 = vector.broadcast %cst_4 : f32 to vector<32x1xf32>
    %11 = arith.maximumf %9, %10 : vector<32x1xf32>
    %12 = math.log %11 : vector<32x1xf32>
    %cst_5 = arith.constant 1.17549435E-38 : f32
    %13 = vector.broadcast %cst_5 : f32 to vector<32x128xf32>
    %14 = arith.maximumf %7, %13 : vector<32x128xf32>
    %15 = math.log %14 : vector<32x128xf32>
    %16 = vector.broadcast %12 : vector<32x1xf32> to vector<32x128xf32>
    %17 = arith.subf %16, %15 : vector<32x128xf32>
    %18 = arith.mulf %7, %17 : vector<32x128xf32>
    %19 = tpu.iota {dimensions = array<i32: 0>} : vector<8x32xi32>
    %20 = tpu.iota {dimensions = array<i32: 1>} : vector<8x32xi32>
    %c8_i32 = arith.constant 8 : i32
    %21 = vector.broadcast %c8_i32 : i32 to vector<8x32xi32>
    %22 = arith.muli %19, %21 : vector<8x32xi32>
    %23 = arith.cmpi sge, %20, %22 : vector<8x32xi32>
    %c8_i32_6 = arith.constant 8 : i32
    %24 = vector.broadcast %c8_i32_6 : i32 to vector<8x32xi32>
    %25 = arith.addi %22, %24 : vector<8x32xi32>
    %26 = arith.cmpi slt, %20, %25 : vector<8x32xi32>
    %27 = arith.andi %23, %26 : vector<8x32xi1>
    %28 = arith.extui %27 : vector<8x32xi1> to vector<8x32xi32>
    %29 = arith.sitofp %28 : vector<8x32xi32> to vector<8x32xf32>
    %cst_7 = arith.constant dense<0.000000e+00> : vector<8x128xf32>
    %30 = tpu.matmul %29, %18, %cst_7 {dimension_numbers = #tpu.dot_dimension_numbers<[1], [0], [0], [1], [0, 0, 1, 1], [], []>} : vector<8x32xf32>, vector<32x128xf32>, vector<8x128xf32> -> vector<8x128xf32>
    %c0_8 = arith.constant 0 : index
    %c0_9 = arith.constant 0 : index
    %c0_10 = arith.constant 0 : index
    %31 = vector.load %arg3[%c0_8, %c0_9, %c0_10] : memref<1x8x128xf32, #tpu.memory_space<vmem>>, vector<1x8x128xf32>
    %32 = vector.shape_cast %31 : vector<1x8x128xf32> to vector<8x128xf32>
    %33 = vector.shape_cast %30 : vector<8x128xf32> to vector<1x8x128xf32>
    tpu.vector_store %arg3[%c0_8, %c0_9, %c0_10], %33 {strides = array<i32>} : memref<1x8x128xf32, #tpu.memory_space<vmem>>, vector<1x8x128xf32>,
    return
  }
  func.func @transform_0(%arg0: i32) -> (i32, i32) {
    %c0_i32 = arith.constant 0 : i32
    %c0_i32_0 = arith.constant 0 : i32
    return %arg0, %c0_i32 : i32, i32
  }
  func.func @transform_1(%arg0: i32) -> (i32, i32) {
    %c0_i32 = arith.constant 0 : i32
    %c0_i32_0 = arith.constant 0 : i32
    %c0_i32_1 = arith.constant 0 : i32
    return %c0_i32, %c0_i32_0 : i32, i32
  }
  func.func @transform_2(%arg0: i32) -> (i32, i32, i32) {
    %c0_i32 = arith.constant 0 : i32
    %c0_i32_0 = arith.constant 0 : i32
    %c0_i32_1 = arith.constant 0 : i32
    return %arg0, %c0_i32, %c0_i32_0 : i32, i32, i32
  }
}

</mosaic_0001>

<bundles_post_ra>
// kernel: custom-call
= control target key start
LH: loop header
LB: loop body
LE: loop exit
PB: predicated region body
PF: predicated region fallthrough
CT: control target
= control target key end

     0   :  { %s126_s0 = inlined_call_operand.vmem [shape: f32[8,8,4], index: 0, kind: input, shape index: {}]   ;;  %s127_s1 = inlined_call_operand.vmem [shape: f32[8,8,4], index: 1, kind: input, shape index: {}]   ;;  %s128_s2 = inlined_call_operand.hbm [shape: c64[8,8,4], index: 2, kind: output, shape index: {}]  }
   0x1   :  { %s87_s11 = scalar_lea.hbm %s128_s2, 512 }
   0x2   :  { %4 = vsyncpa [#allocation0], 0  ;;  %s5_s14 = sshll.u32 %s126_s0, 4  ;;  %s6_s14 = int_to_ptr.vmem [resolvable:$true] %s5_s14 }
   0x3   :  { %s18_s15 = scalar_lea.vmem %s6_s14, 512  ;;  %p23_p1 = scmp.lt.s32.totalorder %s6_s14, %s6_s14 }
   0x4   :  { %p19_p0 = scmp.ne.s32.totalorder %s6_s14, %s18_s15  ;;  %p24_p2 = scmp.lt.s32.totalorder %s18_s15, %s18_s15 }
   0x6   :  { %p25_p3 = por %p24_p2, %p23_p1 }
   0x8   :  { %p26_p4 = pnand %p25_p3, %p19_p0 }
   0xa   :  { %29 = shalt.err (!%p26_p4)  }
   0xb   :  { %p31_p5 = scmp.ne.s32.totalorder %s128_s2, %s87_s11  ;;  %s32_s0 = scalar_lea.hbm %s128_s2, 1024 }
   0xc   :  { %p33_p6 = scmp.lt.u32.totalorder %s32_s0, %s87_s11  ;;  %p34_p7 = scmp.lt.u32.totalorder %s87_s11, %s128_s2 }
   0xe   :  { %p35_p8 = por %p34_p7, %p33_p6 }
  0x10   :  { %p36_p9 = pnand %p35_p8, %p31_p5 }
  0x12   :  { %39 = shalt.err (!%p36_p9)  }
  0x13   :  { %8 = dma.vmem_to_hbm [thread:$0]  %s6_s14, 512, %s128_s2, [#allocation0] }
  0x14   :  { %65 = dma.done.wait [#allocation0], 512  }
  0x15   :  { %66 = vsyncadd [#allocation0], 4294966784 }
  0x16   :  { %10 = vsyncpa [#allocation0], 1 }
  0x17   :  { %11 = vsyncpa [#allocation1], 0  ;;  %s12_s28 = sshll.u32 %s127_s1, 4  ;;  %s13_s28 = int_to_ptr.vmem [resolvable:$true] %s12_s28 }
  0x18   :  { %s40_s29 = scalar_lea.vmem %s13_s28, 512  ;;  %p45_p11 = scmp.lt.s32.totalorder %s13_s28, %s13_s28 }
  0x19   :  { %p41_p10 = scmp.ne.s32.totalorder %s13_s28, %s40_s29  ;;  %p46_p12 = scmp.lt.s32.totalorder %s40_s29, %s40_s29 }
  0x1b   :  { %p47_p13 = por %p46_p12, %p45_p11 }
  0x1d   :  { %p48_p0 = pnand %p47_p13, %p41_p10 }
  0x1f   :  { %51 = shalt.err (!%p48_p0)  }
  0x20   :  { %p53_p1 = scmp.ne.s32.totalorder %s87_s11, %s32_s0  ;;  %p56_p2 = scmp.lt.u32.totalorder %s32_s0, %s32_s0 }
  0x22   :  { %p57_p3 = por %p56_p2, %p34_p7 }
  0x24   :  { %p59_p4 = por %p57_p3, %p33_p6 }
  0x26   :  { %p60_p5 = pnand %p59_p4, %p53_p1 }
  0x28   :  { %63 = shalt.err (!%p60_p5)  }
  0x29   :  { %15 = dma.vmem_to_hbm [thread:$0]  %s13_s28, 512, %s87_s11, [#allocation1] }
  0x2a   :  { %67 = dma.done.wait [#allocation1], 512  }
  0x2b   :  { %68 = vsyncadd [#allocation1], 4294966784 }
  0x2c   :  { %17 = vsyncpa [#allocation1], 1 }

// kernel: coherence_of_formation_batched.1
= control target key start
LH: loop header
LB: loop body
LE: loop exit
PB: predicated region body
PF: predicated region fallthrough
CT: control target
= control target key end

     0   :  { %s534_s9 = smov 0   ;;  %s573_s0 = inlined_call_operand.vmem [shape: f32[64,8], index: 0, kind: input, shape index: {}]   ;;  %s574_s1 = inlined_call_operand.vmem [shape: f32[8,256], index: 1, kind: input, shape index: {}]   ;;  %s575_s2 = inlined_call_operand.vmem [shape: f32[2,8,128], index: 2, kind: output, shape index: {}]  }
   0x1 LB: > { %s540_s10 = sadd.s32 4294967295, %s514_s9   ;;  %p447_p0 = scmp.ge.s32.totalorder %s514_s9, 1  ;;  %s514_s9 = sphi %s534_s9, %s12_s9  }
   0x2   : > { %p113_p1 = scmp.lt.s32.totalorder %s514_s9, 3 }
   0x4   : > { %p114_p2 = pnand %p447_p0, %p113_p1 }
   0x5   : > { %v149_v0 = vld [vmem:[%s574_s1 + $0x8] sm:$0xff] (!%p114_p2)  ;;  %v148_v1 = vld [vmem:[%s574_s1] sm:$0xff] (!%p114_p2)  ;;  %s448_s15 = sshll.u32 (!%p114_p2), %s540_s10, 2  ;;  %v516_v2 = vmov (!%p114_p2), 0.0   ;;  %vm150_vm0 = vcmask (!%p114_p2), 64512   ;;  %v517_v27 = vmov (!%p114_p2), 0.0|0.0   ;;  %v304_v40 = vlaneseq (!%p114_p2) }
   0x6   : > { %117 = sbr.rel (%p114_p2) target bundleno = 625 (0x271), region = 28  ;;  %163 = vmatprep.subr.mxu0 (!%p114_p2), %v149_v0  ;;  %227 = vmatprep.mubr.f32.mxu0 (!%p114_p2), %v516_v2  ;;  %p135_p3 = scmp.lt.s32.totalorder (!%p114_p2), %s448_s15, 7  ;;  %vm518_vm1 = vmmov (!%p114_p2), 0   ;;  %vm315_vm5 = vcmask (!%p114_p2), 261120  }
   0x7   : > { %164 = vmatpush1.msra.mxu0 (!%p114_p2), %v148_v1  ;;  %475 = vmatprep.subr.bf16.mxu1 (!%p114_p2), %v517_v27  ;;  %v305_v46 = vshrl.u32 (!%p114_p2), %v304_v40, 7  ;;  %v307_v61 = vand.u32 (!%p114_p2), 127, %v304_v40  ;;  %p140_p4 = scmp.lt.s32.totalorder (!%p114_p2), %s540_s10, 1 }
   0x8   : > { %472 = vmatprep.mubr.msk.f32.mxu1 (!%p114_p2), %vm518_vm1, %v516_v2 }
   0x9   : > { %v308_v53 = vmul.u32 (!%p114_p2), 8, %v305_v46 }
   0xb   : > { %v310_v62 = vadd.s32 (!%p114_p2), 8, %v308_v53  ;;  %vm309_vm2 = vcmp.ge.s32.totalorder (!%p114_p2), %v307_v61, %v308_v53 }
   0xd   : > { %s577_s15 = smov (!%p135_p3, %s448_s15), 7  ;;  %vm311_vm3 = vcmp.lt.s32.totalorder %v307_v61, %v310_v62  ;;  %s579_s10 = smov (!%p140_p4, %s540_s10), 1 }
   0xe   : > { %s449_s16 = sshll.u32 %s577_s15, 3  ;;  %vm312_vm4 = vmand %vm309_vm2, %vm311_vm3  ;;  %s450_s20 = sshll.u32 %s579_s10, 3 }
   0xf   : > { %s138_s19 = scalar_lea.vmem %s573_s0, %s449_s16  ;;  %s143_s23 = scalar_lea.vmem %s575_s2, %s450_s20 }
  0x10   : > { %v144_v3 = vld [vmem:[%s138_s19] sm:$0xff]  ;;  %v145_v4 = vld [vmem:[%s138_s19 + $0x8] sm:$0xff]  ;;  %v146_v5 = vld [vmem:[%s138_s19 + $0x10] sm:$0xff] }
  0x11   : > { %451 = vmatmul.mubr.msk.f32.vlgmr.msra.gmra.mrb[0].mxu0 %vm150_vm0, %v144_v3  ;;  %v147_v6 = vld [vmem:[%s138_s19 + $0x18] sm:$0xff] }
  0x12   : > { %233 = vmatprep.mubr.f32.mxu0 %v516_v2 }
  0x15   : > { %452 = vmatmul.mubr.msk.f32.gmra.mrb[2].mxu0 %vm150_vm0, %v145_v4 }
  0x16   : > { %239 = vmatprep.mubr.f32.mxu0 %v516_v2 }
  0x19   : > { %453 = vmatmul.mubr.msk.f32.gmra.mrb[4].mxu0 %vm150_vm0, %v146_v5 }
  0x1a   : > { %245 = vmatprep.mubr.f32.mxu0 %v516_v2 }
  0x1d   : > { %454 = vmatmul.mubr.msk.f32.gmra.mrb[6].mxu0 %vm150_vm0, %v147_v6 }
  0xe4   : > { %v229_v7 = vpop.f32.mrb[0].mxu0 }
  0xe5   : > { %v252_v8 = vmul.f32 %v229_v7, %v229_v7  ;;  %v231_v9 = vpop.f32.mrb[1].mxu0 }
  0xe6   : > { %v256_v10 = vmul.f32 %v231_v9, %v231_v9 }
  0xe8   : > { %v260_v11 = vadd.f32 %v256_v10, %v252_v8  ;;  %v235_v12 = vpop.f32.mrb[2].mxu0  ;;  %v455_v8 = vsel %vm312_vm4, 1.0, %v516_v2 }
  0xe9   : > { %v253_v13 = vmul.f32 %v235_v12, %v235_v12  ;;  %v237_v14 = vpop.f32.mrb[3].mxu0 }
  0xea   : > { %v257_v15 = vmul.f32 %v237_v14, %v237_v14  ;;  %264 = vadd.xlane.f32.xlu0 %v260_v11  ;;  %v284_v28 = vmax.f32 %v260_v11, 1.1754944e-38 }
  0xec   : > { %v261_v16 = vadd.f32 %v257_v15, %v253_v13  ;;  %v241_v17 = vpop.f32.mrb[4].mxu0  ;;  %492 = vlog2.f32 %v284_v28 }
  0xed   : > { %v254_v18 = vmul.f32 %v241_v17, %v241_v17  ;;  %v243_v19 = vpop.f32.mrb[5].mxu0 }
  0xee   : > { %v258_v20 = vmul.f32 %v243_v19, %v243_v19  ;;  %266 = vadd.xlane.f32.xlu0 %v261_v16  ;;  %v285_v30 = vmax.f32 %v261_v16, 1.1754944e-38 }
  0xf0   : > { %v558_v21 = vadd.f32 %v258_v20, %v254_v18  ;;  %v247_v22 = vpop.f32.mrb[6].mxu0 }
  0xf1   : > { %v255_v23 = vmul.f32 %v247_v22, %v247_v22  ;;  %v249_v24 = vpop.f32.mrb[7].mxu0 }
  0xf2   : > { %v259_v25 = vmul.f32 %v249_v24, %v249_v24  ;;  %268 = vadd.xlane.f32.xlu1 %v558_v21  ;;  %v286_v34 = vmax.f32 %v558_v21, 1.1754944e-38 }
  0xf4   : > { %v263_v26 = vadd.f32 %v259_v25, %v255_v23 }
  0xf6   : > { %270 = vadd.xlane.f32.xlu1 %v263_v26  ;;  %v287_v36 = vmax.f32 %v263_v26, 1.1754944e-38  ;;  %v493_v38 = vpop.eup %492 }
  0xf7   : > { %v289_v45 = vmul.f32 0.6931472, %v493_v38 }
 0x177   : > { %v265_v29 = vpop.xlane.xlu0 %264 }
 0x178   : > { %v272_v31 = vmax.f32 %v265_v29, 1.1754944e-38 }
 0x17a   : > { %494 = vlog2.f32 %v272_v31 }
 0x17b   : > { %v267_v32 = vpop.xlane.xlu0 %266  ;;  %496 = vlog2.f32 %v285_v30 }
 0x17c   : > { %v273_v33 = vmax.f32 %v267_v32, 1.1754944e-38 }
 0x17e   : > { %498 = vlog2.f32 %v273_v33 }
 0x17f   : > { %v269_v35 = vpop.xlane.xlu1 %268  ;;  %500 = vlog2.f32 %v286_v34 }
 0x180   : > { %v274_v37 = vmax.f32 %v269_v35, 1.1754944e-38 }
 0x182   : > { %502 = vlog2.f32 %v274_v37 }
 0x183   : > { %v271_v39 = vpop.xlane.xlu1 %270  ;;  %504 = vlog2.f32 %v287_v36 }
 0x184   : > { %v495_v41 = vpop.eup %494  ;;  %v275_v42 = vmax.f32 %v271_v39, 1.1754944e-38 }
 0x185   : > { %v277_v43 = vmul.f32 0.6931472, %v495_v41  ;;  %v497_v44 = vpop.eup %496 }
 0x186   : > { %506 = vlog2.f32 %v275_v42  ;;  %v291_v49 = vmul.f32 0.6931472, %v497_v44 }
 0x187   : > { %v296_v50 = vsub.f32 %v277_v43, %v289_v45 }
 0x188   : > { %v499_v47 = vpop.eup %498 }
 0x189   : > { %v279_v48 = vmul.f32 0.6931472, %v499_v47  ;;  %v501_v51 = vpop.eup %500  ;;  %v300_v56 = vmul.f32 %v296_v50, %v260_v11 }
 0x18a   : > { %v293_v59 = vmul.f32 0.6931472, %v501_v51 }
 0x18b   : > { %v297_v52 = vsub.f32 %v279_v48, %v291_v49 }
 0x18c   : > { %v503_v54 = vpop.eup %502 }
 0x18d   : > { %v281_v55 = vmul.f32 0.6931472, %v503_v54  ;;  %v301_v57 = vmul.f32 %v297_v52, %v261_v16  ;;  %v505_v58 = vpop.eup %504 }
 0x18e   : > { %v295_v3 = vmul.f32 0.6931472, %v505_v58 }
 0x18f   : > { %v476_v60 = vpack.c.bf16 %v301_v57, %v300_v56  ;;  %v298_v0 = vsub.f32 %v281_v55, %v293_v59 }
 0x190   : > { %v507_v63 = vpop.eup %506 }
 0x191   : > { %v283_v1 = vmul.f32 0.6931472, %v507_v63  ;;  %477 = vmatpush3.bf16.msra.mxu1 %v476_v60  ;;  %v302_v5 = vmul.f32 %v298_v0, %v558_v21 }
 0x192   : > { %478 = vmatprep.subr.bf16.mxu1 %v517_v27 }
 0x193   : > { %v299_v4 = vsub.f32 %v283_v1, %v295_v3 }
 0x195   : > { %v303_v6 = vmul.f32 %v299_v4, %v263_v26 }
 0x197   : > { %v479_v7 = vpack.c.bf16 %v303_v6, %v302_v5 }
 0x199   : > { %480 = vmatpush3.bf16.msra.mxu1 %v479_v7 }
 0x19c   : > { %473 = vmatmul.mubr.msk.f32.vlgmr.msra.gmra.mrb[0].mxu1 %vm315_vm5, %v455_v8 }
 0x26f   : > { %v385_v9 = vpop.f32.mrb[0].mxu1 }
 0x270   : > { %389 = vst [vmem:[%s143_s23] sm:$0xff] %v385_v9  ;;  %v474_v10 = vpop.f32.mrb[1].mxu1 }
 0x271 PF: > { %s12_s9 = sadd.s32 1, %s514_s9  }
 0x272   : > { %p9_p5 = scmp.ge.s32.totalorder %s12_s9, 4  }
 0x274   :  { %11 = sbr.rel (!%p9_p5) target bundleno = 1 (0x1), region = 58 }

</bundles_post_ra>
